<compile_context>
chip_gen: v7x
topology: tpu7x:2x2x1
jax: 0.10.0
libtpu: 0.0.40
codegen_flags: <defaults>
</compile_context>

<pallas_src>
import jax
import jax.numpy as jnp
from jax.experimental import pallas as pl
from jax.experimental.pallas import tpu as pltpu


def sarsa_mlp_kernel(x_ref, w1_ref, b1_ref, w2_ref, b2_ref, w3_ref, b3_ref, o_ref):
    # Feature-major: x is (input_dim, TILE_B) bf16, batch on the 128-lane axis.
    x = x_ref[...]
    # Layer 1: Linear + ReLU (bf16 MXU matmul, f32 accumulate, f32 bias/ReLU).
    h1 = jnp.dot(w1_ref[...], x, preferred_element_type=jnp.float32)
    h1 = jnp.maximum(h1 + b1_ref[...], 0.0).astype(jnp.bfloat16)          # (H, TB)
    # Layer 2: Linear + ReLU.
    h2 = jnp.dot(w2_ref[...], h1, preferred_element_type=jnp.float32)
    h2 = jnp.maximum(h2 + b2_ref[...], 0.0).astype(jnp.bfloat16)          # (H, TB)
    # Layer 3: Linear (raw Q-values). Action dim padded to 8 -> unmasked stores.
    q = jnp.dot(w3_ref[...], h2, preferred_element_type=jnp.float32) + b3_ref[...]
    o_ref[...] = q.astype(o_ref.dtype)                                    # (8, TB)


def _round_up(x, m):
    return ((x + m - 1) // m) * m


def _cdiv(a, b):
    return (a + b - 1) // b


# Multiple of the 128-lane vreg width and of the 256-wide v6e/v7x MXU.
_LANE_ALIGN = 256


def _choose_tiling(B, tile_b_max):
    """Pick (tile_b, n_tiles): tile_b a multiple of 256, n_tiles even for large B."""
    tile_b_max = max(_LANE_ALIGN, (tile_b_max // _LANE_ALIGN) * _LANE_ALIGN)
    b_al = _round_up(max(B, 1), _LANE_ALIGN)
    if b_al <= _LANE_ALIGN:
        return _LANE_ALIGN, 1                      # tiny batch: one grid step
    # >= 2 tiles (even count -> both v7x TensorCores get equal work), each a
    # multiple of 256 and <= tile_b_max; padding waste < 256 per tile.
    n_tiles = max(2, 2 * _cdiv(b_al, 2 * tile_b_max))
    tile_b = _round_up(_cdiv(b_al, n_tiles), _LANE_ALIGN)
    return tile_b, n_tiles


def sarsa_forward(x, params, *, tile_b_max=8192):
    """x: (B, input_dim) float32 -> (B, action_dim) float32 Q-values."""
    w1, b1, w2, b2, w3, b3 = params
    B, input_dim = x.shape
    action_dim = w3.shape[0]

    if B == 0:
        return jnp.zeros((0, action_dim), x.dtype)

    tile_b, n_tiles = _choose_tiling(B, tile_b_max)
    b_pad = tile_b * n_tiles

    # Pad action dim 7 -> 8: sublane-aligned (8, tile_b) output blocks.
    a_pad = _round_up(action_dim, 8)
    w3p = jnp.pad(w3, ((0, a_pad - action_dim), (0, 0)))
    b3p = jnp.pad(b3, ((0, a_pad - action_dim), (0, 0)))

    # Feature-major + bf16 x: lane-dense loads, half the x HBM read. Padded
    # batch columns are zero and sliced off below.
    x_t = jnp.pad(x, ((0, b_pad - B), (0, 0))).T.astype(jnp.bfloat16)      # (in, Bp)
    w1b, w2b, w3b = (w.astype(jnp.bfloat16) for w in (w1, w2, w3p))

    resident = lambda a: pl.BlockSpec(a.shape, lambda i: (0, 0))

    q_t = pl.pallas_call(
        sarsa_mlp_kernel,
        out_shape=jax.ShapeDtypeStruct((a_pad, b_pad), jnp.float32),
        grid=(n_tiles,),
        in_specs=[
            pl.BlockSpec((input_dim, tile_b), lambda i: (0, i)),   # streamed x tile
            resident(w1b), resident(b1),                           # resident params
            resident(w2b), resident(b2),
            resident(w3b), resident(b3p),
        ],
        out_specs=pl.BlockSpec((a_pad, tile_b), lambda i: (0, i)),
        compiler_params=pltpu.CompilerParams(
            dimension_semantics=("parallel",)),   # batch tiles across v7x's 2 TCs
    )(x_t, w1b, b1, w2b, b2, w3b, b3p)

    # Module contract: batch-major (B, action_dim). The slice+transpose fuses
    # into the consumer under jit; consumers that accept feature-major Q should
    # use q_t[:action_dim, :B] directly to skip this pass.
    return q_t[:action_dim, :B].T


def init_params(key, input_dim=8, action_dim=7, hidden_dim=32):
    """Deterministic synthetic init, PyTorch Linear convention: W (out, in), b (out, 1)."""
    ks = jax.random.split(key, 6)

    def linear(kw, kb, fan_in, fan_out):
        bound = 1.0 / jnp.sqrt(fan_in)
        w = jax.random.uniform(kw, (fan_out, fan_in), jnp.float32, -bound, bound)
        b = jax.random.uniform(kb, (fan_out, 1), jnp.float32, -bound, bound)
        return w, b

    w1, b1 = linear(ks[0], ks[1], input_dim, hidden_dim)
    w2, b2 = linear(ks[2], ks[3], hidden_dim, hidden_dim)
    w3, b3 = linear(ks[4], ks[5], hidden_dim, action_dim)
    return (w1, b1, w2, b2, w3, b3)


def reference_forward(x, params):
    """Pure-JAX reference mirroring the kernel's bf16-input / f32-accumulate math."""
    w1, b1, w2, b2, w3, b3 = params
    hp = jax.lax.Precision.HIGHEST
    bf = lambda a: a.astype(jnp.bfloat16).astype(jnp.float32)
    h = jnp.maximum(jnp.dot(bf(w1), bf(x).T, precision=hp) + b1, 0.0)
    h = jnp.maximum(jnp.dot(bf(w2), bf(h), precision=hp) + b2, 0.0)
    q = jnp.dot(bf(w3), bf(h), precision=hp) + b3
    return q.T


if __name__ == "__main__":
    key = jax.random.PRNGKey(0)
    k_x, k_x2, k_p = jax.random.split(key, 3)

    input_dim, action_dim, hidden_dim = 8, 7, 32
    params = init_params(k_p, input_dim, action_dim, hidden_dim)
    fwd = jax.jit(sarsa_forward)

    # Small case (typical RL inference batch) -> single 256-wide tile.
    x_small = jax.random.normal(k_x, (2, input_dim), dtype=jnp.float32)
    q_small = jax.block_until_ready(fwd(x_small, params))
    assert q_small.shape == (2, action_dim)
    assert jnp.allclose(q_small, reference_forward(x_small, params), atol=1e-3, rtol=1e-3)

    # Larger, non-multiple-of-tile batch: exercises the even two-tile grid,
    # double buffering, megacore parallelism and the tight padding/slice path.
    x_big = jax.random.normal(k_x2, (5000, input_dim), dtype=jnp.float32)
    q_big = jax.block_until_ready(fwd(x_big, params))
    assert q_big.shape == (5000, action_dim)
    assert jnp.allclose(q_big, reference_forward(x_big, params), atol=1e-3, rtol=1e-3)

    print("KERNEL_OK")
</pallas_src>

<mosaic_0001>
module attributes {stable_mosaic.version = 11 : i64} {
  func.func @sarsa_mlp_kernel(%arg0: i32, %arg1: memref<8x256xbf16, #tpu.memory_space<vmem>>, %arg2: memref<32x8xbf16, #tpu.memory_space<vmem>>, %arg3: memref<32x1xf32, #tpu.memory_space<vmem>>, %arg4: memref<32x32xbf16, #tpu.memory_space<vmem>>, %arg5: memref<32x1xf32, #tpu.memory_space<vmem>>, %arg6: memref<8x32xbf16, #tpu.memory_space<vmem>>, %arg7: memref<8x1xf32, #tpu.memory_space<vmem>>, %arg8: memref<8x256xf32, #tpu.memory_space<vmem>>) attributes {dimension_semantics = [#tpu.dimension_semantics<parallel>], iteration_bounds = array<i64: 1>, scalar_prefetch = 0 : i64, scratch_operands = 0 : i64, tpu.core_type = #tpu.core_type<tc>, window_params = [{transform_indices = @transform_0, window_bounds = array<i64: 8, 256>}, {pipeline_mode = #tpu.pipeline_mode<synchronous>, transform_indices = @transform_1, window_bounds = array<i64: 32, 8>}, {pipeline_mode = #tpu.pipeline_mode<synchronous>, transform_indices = @transform_2, window_bounds = array<i64: 32, 1>}, {pipeline_mode = #tpu.pipeline_mode<synchronous>, transform_indices = @transform_3, window_bounds = array<i64: 32, 32>}, {pipeline_mode = #tpu.pipeline_mode<synchronous>, transform_indices = @transform_4, window_bounds = array<i64: 32, 1>}, {pipeline_mode = #tpu.pipeline_mode<synchronous>, transform_indices = @transform_5, window_bounds = array<i64: 8, 32>}, {pipeline_mode = #tpu.pipeline_mode<synchronous>, transform_indices = @transform_6, window_bounds = array<i64: 8, 1>}, {transform_indices = @transform_7, window_bounds = array<i64: 8, 256>}]} {
    %c0 = arith.constant 0 : index
    %c0_0 = arith.constant 0 : index
    %0 = vector.load %arg1[%c0, %c0_0] : memref<8x256xbf16, #tpu.memory_space<vmem>>, vector<8x256xbf16>
    %c0_1 = arith.constant 0 : index
    %c0_2 = arith.constant 0 : index
    %1 = vector.load %arg2[%c0_1, %c0_2] : memref<32x8xbf16, #tpu.memory_space<vmem>>, vector<32x8xbf16>
    %cst = arith.constant dense<0.000000e+00> : vector<32x256xf32>
    %2 = tpu.matmul %1, %0, %cst {dimension_numbers = #tpu.dot_dimension_numbers<[1], [0], [0], [1], [0, 0, 1, 1], [], []>} : vector<32x8xbf16>, vector<8x256xbf16>, vector<32x256xf32> -> vector<32x256xf32>
    %c0_3 = arith.constant 0 : index
    %c0_4 = arith.constant 0 : index
    %3 = vector.load %arg3[%c0_3, %c0_4] : memref<32x1xf32, #tpu.memory_space<vmem>>, vector<32x1xf32>
    %4 = vector.broadcast %3 : vector<32x1xf32> to vector<32x256xf32>
    %5 = arith.addf %2, %4 : vector<32x256xf32>
    %cst_5 = arith.constant 0.000000e+00 : f32
    %6 = vector.broadcast %cst_5 : f32 to vector<32x256xf32>
    %7 = arith.maximumf %5, %6 : vector<32x256xf32>
    %8 = arith.truncf %7 : vector<32x256xf32> to vector<32x256xbf16>
    %c0_6 = arith.constant 0 : index
    %c0_7 = arith.constant 0 : index
    %9 = vector.load %arg4[%c0_6, %c0_7] : memref<32x32xbf16, #tpu.memory_space<vmem>>, vector<32x32xbf16>
    %cst_8 = arith.constant dense<0.000000e+00> : vector<32x256xf32>
    %10 = tpu.matmul %9, %8, %cst_8 {dimension_numbers = #tpu.dot_dimension_numbers<[1], [0], [0], [1], [0, 0, 1, 1], [], []>} : vector<32x32xbf16>, vector<32x256xbf16>, vector<32x256xf32> -> vector<32x256xf32>
    %c0_9 = arith.constant 0 : index
    %c0_10 = arith.constant 0 : index
    %11 = vector.load %arg5[%c0_9, %c0_10] : memref<32x1xf32, #tpu.memory_space<vmem>>, vector<32x1xf32>
    %12 = vector.broadcast %11 : vector<32x1xf32> to vector<32x256xf32>
    %13 = arith.addf %10, %12 : vector<32x256xf32>
    %cst_11 = arith.constant 0.000000e+00 : f32
    %14 = vector.broadcast %cst_11 : f32 to vector<32x256xf32>
    %15 = arith.maximumf %13, %14 : vector<32x256xf32>
    %16 = arith.truncf %15 : vector<32x256xf32> to vector<32x256xbf16>
    %c0_12 = arith.constant 0 : index
    %c0_13 = arith.constant 0 : index
    %17 = vector.load %arg6[%c0_12, %c0_13] : memref<8x32xbf16, #tpu.memory_space<vmem>>, vector<8x32xbf16>
    %cst_14 = arith.constant dense<0.000000e+00> : vector<8x256xf32>
    %18 = tpu.matmul %17, %16, %cst_14 {dimension_numbers = #tpu.dot_dimension_numbers<[1], [0], [0], [1], [0, 0, 1, 1], [], []>} : vector<8x32xbf16>, vector<32x256xbf16>, vector<8x256xf32> -> vector<8x256xf32>
    %c0_15 = arith.constant 0 : index
    %c0_16 = arith.constant 0 : index
    %19 = vector.load %arg7[%c0_15, %c0_16] : memref<8x1xf32, #tpu.memory_space<vmem>>, vector<8x1xf32>
    %20 = vector.broadcast %19 : vector<8x1xf32> to vector<8x256xf32>
    %21 = arith.addf %18, %20 : vector<8x256xf32>
    %c0_17 = arith.constant 0 : index
    %c0_18 = arith.constant 0 : index
    %22 = vector.load %arg8[%c0_17, %c0_18] : memref<8x256xf32, #tpu.memory_space<vmem>>, vector<8x256xf32>
    tpu.vector_store %arg8[%c0_17, %c0_18], %21 {strides = array<i32>} : memref<8x256xf32, #tpu.memory_space<vmem>>, vector<8x256xf32>,
    return
  }
  func.func @transform_0(%arg0: i32) -> (i32, i32) {
    %c0_i32 = arith.constant 0 : i32
    %c0_i32_0 = arith.constant 0 : i32
    return %c0_i32, %arg0 : i32, i32
  }
  func.func @transform_1(%arg0: i32) -> (i32, i32) {
    %c0_i32 = arith.constant 0 : i32
    %c0_i32_0 = arith.constant 0 : i32
    %c0_i32_1 = arith.constant 0 : i32
    return %c0_i32, %c0_i32_0 : i32, i32
  }
  func.func @transform_2(%arg0: i32) -> (i32, i32) {
    %c0_i32 = arith.constant 0 : i32
    %c0_i32_0 = arith.constant 0 : i32
    %c0_i32_1 = arith.constant 0 : i32
    return %c0_i32, %c0_i32_0 : i32, i32
  }
  func.func @transform_3(%arg0: i32) -> (i32, i32) {
    %c0_i32 = arith.constant 0 : i32
    %c0_i32_0 = arith.constant 0 : i32
    %c0_i32_1 = arith.constant 0 : i32
    return %c0_i32, %c0_i32_0 : i32, i32
  }
  func.func @transform_4(%arg0: i32) -> (i32, i32) {
    %c0_i32 = arith.constant 0 : i32
    %c0_i32_0 = arith.constant 0 : i32
    %c0_i32_1 = arith.constant 0 : i32
    return %c0_i32, %c0_i32_0 : i32, i32
  }
  func.func @transform_5(%arg0: i32) -> (i32, i32) {
    %c0_i32 = arith.constant 0 : i32
    %c0_i32_0 = arith.constant 0 : i32
    %c0_i32_1 = arith.constant 0 : i32
    return %c0_i32, %c0_i32_0 : i32, i32
  }
  func.func @transform_6(%arg0: i32) -> (i32, i32) {
    %c0_i32 = arith.constant 0 : i32
    %c0_i32_0 = arith.constant 0 : i32
    %c0_i32_1 = arith.constant 0 : i32
    return %c0_i32, %c0_i32_0 : i32, i32
  }
  func.func @transform_7(%arg0: i32) -> (i32, i32) {
    %c0_i32 = arith.constant 0 : i32
    %c0_i32_0 = arith.constant 0 : i32
    return %c0_i32, %arg0 : i32, i32
  }
}

</mosaic_0001>

<bundles_post_ra>
// kernel: sarsa_forward.1
= control target key start
LH: loop header
LB: loop body
LE: loop exit
PB: predicated region body
PF: predicated region fallthrough
CT: control target
= control target key end

     0   :  { %vm78_vm0 = vcmask 1043456   ;;  %v338_v1 = vmov 0   ;;  %vm71_vm1 = vcmask 64512   ;;  %vm188_vm2 = vcmask 261120   ;;  %s442_s0 = inlined_call_operand.vmem [shape: bf16[8,256], index: 0, kind: input, shape index: {}]   ;;  %s443_s1 = inlined_call_operand.vmem [shape: bf16[32,8], index: 1, kind: input, shape index: {}]   ;;  %s444_s2 = inlined_call_operand.vmem [shape: f32[32,1], index: 2, kind: input, shape index: {}]   ;;  %s445_s4 = inlined_call_operand.vmem [shape: f32[32,1], index: 4, kind: input, shape index: {}]   ;;  %s446_s6 = inlined_call_operand.vmem [shape: f32[8,1], index: 6, kind: input, shape index: {}]   ;;  %s447_s3 = inlined_call_operand.vmem [shape: bf16[32,32], index: 3, kind: input, shape index: {}]   ;;  %s448_s5 = inlined_call_operand.vmem [shape: bf16[8,32], index: 5, kind: input, shape index: {}]   ;;  %s449_s7 = inlined_call_operand.vmem [shape: f32[8,256], index: 7, kind: output, shape index: {}]  }
   0x1   :  { %v27_v0 = vld [vmem:[%s442_s0] sm:$0xff]  ;;  %117 = vmatprep.mubr.bf16.mxu0 %v338_v1  ;;  %330 = vset.pattern.permute.xlu0 %v338_v1  ;;  %v34_v7 = vld [vmem:[%s444_s2 + $0x10] sm:$0xff]  ;;  %v33_v8 = vld [vmem:[%s444_s2 + $0x8] sm:$0xff] }
   0x2   :  { %v320_v2 = vcombine.high %v27_v0, %v27_v0  ;;  %v319_v3 = vcombine.low %v27_v0, %v27_v0  ;;  %331 = vset.pattern.permute.xlu1 %v338_v1  ;;  %227 = vmatprep.mubr.bf16.mxu1 %v338_v1  ;;  %v32_v4 = vld [vmem:[%s444_s2] sm:$0xff]  ;;  %v35_v9 = vld [vmem:[%s444_s2 + $0x18] sm:$0xff]  ;;  %v155_v11 = vld [vmem:[%s445_s4 + $0x8] sm:$0xff] }
   0x3   :  { %v334_v6 = vld [vmem:[%s443_s1] sm:$0xff]   ;;  %38 = vperm.xlu0 %330, %v32_v4   ;;  %48 = vperm.xlu1 %331, %v34_v7   ;;  %v335_v12 = vld [vmem:[%s443_s1 + $0x8] sm:$0xff]   ;;  %v156_v13 = vld [vmem:[%s445_s4 + $0x10] sm:$0xff] }
   0x4   :  { %321 = vmatprep.subr.msk.bf16.mxu0 %vm78_vm0, %v320_v2  ;;  %v80_v5 = vsel %vm78_vm0, %v319_v3, 0  ;;  %v154_v10 = vld [vmem:[%s445_s4] sm:$0xff]  ;;  %v157_v14 = vld [vmem:[%s445_s4 + $0x18] sm:$0xff]  ;;  %v337_v49 = vld [vmem:[%s447_s3 + $0x8] sm:$0xff]  }
   0x5   :  { %86 = vmatpush1.bf16.msra.mxu0 %v80_v5  ;;  %v261_v15 = vld [vmem:[%s446_s6] sm:$0xff] }
   0x6   :  { %v336_v48 = vld [vmem:[%s447_s3] sm:$0xff]  }
   0x7   :  { %43 = vperm.xlu0 %330, %v33_v8   ;;  %53 = vperm.xlu1 %331, %v35_v9  }
   0x8   :  { %322 = vmatmul.mubr.msk.bf16.vlgmr.msra.gmra.mrb[0].mxu0 %vm71_vm1, %v334_v6 }
   0x9   :  { %127 = vmatprep.mubr.bf16.mxu0 %v338_v1 }
   0xb   :  { %160 = vperm.xlu0 %330, %v154_v10   ;;  %165 = vperm.xlu1 %331, %v155_v11  }
   0xf   :  { %170 = vperm.xlu0 %330, %v156_v13   ;;  %175 = vperm.xlu1 %331, %v157_v14  }
  0x10   :  { %323 = vmatmul.mubr.msk.bf16.gmra.mrb[4].mxu0 %vm71_vm1, %v335_v12 }
  0x11   :  { %302 = vmatprep.mubr.bf16.mxu0 %v338_v1 }
  0x13   :  { %264 = vperm.xlu0 %330, %v261_v15  }
  0x82   :  { %v39_v16 = vpop.permute.xlu0 %38  ;;  %v49_v25 = vpop.permute.xlu1 %48 }
  0x86   :  { %v44_v20 = vpop.permute.xlu0 %43  ;;  %v54_v36 = vpop.permute.xlu1 %53 }
  0x8a   :  { %v161_v50 = vpop.permute.xlu0 %160  ;;  %v166_v54 = vpop.permute.xlu1 %165 }
  0x8e   :  { %v176_v6 = vpop.permute.xlu1 %175 }
  0xdb   :  { %v119_v17 = vpop.f32.mrb[0].mxu0 }
  0xdc   :  { %v120_v18 = vadd.f32 %v119_v17, %v39_v16  ;;  %v121_v19 = vpop.f32.mrb[1].mxu0 }
  0xdd   :  { %v122_v21 = vadd.f32 %v121_v19, %v39_v16  ;;  %v123_v22 = vpop.f32.mrb[2].mxu0 }
  0xde   :  { %v124_v23 = vadd.f32 %v123_v22, %v44_v20  ;;  %v125_v24 = vpop.f32.mrb[3].mxu0  ;;  %v138_v27 = vmax.f32 %v120_v18, 0.0  ;;  %v260_v18 = vld [vmem:[%s448_s5] sm:$0xf] }
  0xdf   :  { %v126_v26 = vadd.f32 %v125_v24, %v44_v20  ;;  %v139_v29 = vmax.f32 %v122_v21, 0.0 }
  0xe0   :  { %v140_v28 = vmax.f32 %v124_v23, 0.0 }
  0xe1   :  { %v141_v30 = vmax.f32 %v126_v26, 0.0 }
  0xe2   :  { %v146_v31 = vpack.c.bf16 %v140_v28, %v138_v27 }
  0xe3   :  { %v129_v32 = vpop.f32.mrb[4].mxu0  ;;  %v147_v33 = vpack.c.bf16 %v141_v30, %v139_v29 }
  0xe4   :  { %v130_v34 = vadd.f32 %v129_v32, %v49_v25  ;;  %v131_v35 = vpop.f32.mrb[5].mxu0 }
  0xe5   :  { %v132_v37 = vadd.f32 %v131_v35, %v49_v25  ;;  %v133_v38 = vpop.f32.mrb[6].mxu0  ;;  %195 = vmatprep.subr.bf16.mxu1 %v147_v33 }
  0xe6   :  { %v134_v39 = vadd.f32 %v133_v38, %v54_v36  ;;  %v135_v40 = vpop.f32.mrb[7].mxu0  ;;  %196 = vmatpush1.bf16.msra.mxu1 %v146_v31  ;;  %v142_v42 = vmax.f32 %v130_v34, 0.0 }
  0xe7   :  { %v136_v41 = vadd.f32 %v135_v40, %v54_v36  ;;  %v143_v44 = vmax.f32 %v132_v37, 0.0 }
  0xe8   :  { %v144_v43 = vmax.f32 %v134_v39, 0.0 }
  0xe9   :  { %v145_v45 = vmax.f32 %v136_v41, 0.0 }
  0xea   :  { %v148_v46 = vpack.c.bf16 %v144_v43, %v142_v42 }
  0xeb   :  { %v149_v47 = vpack.c.bf16 %v145_v45, %v143_v44 }
  0xed   :  { %197 = vmatprep.subr.bf16.mxu1 %v149_v47 }
  0xee   :  { %198 = vmatpush1.bf16.msra.mxu1 %v148_v46 }
  0xf1   :  { %326 = vmatmul.mubr.msk.bf16.vlgmr.msra.gmra.mrb[0].mxu1 %vm188_vm2, %v336_v48 }
  0xf2   :  { %237 = vmatprep.mubr.bf16.mxu1 %v338_v1  ;;  %v171_v1 = vpop.permute.xlu0 %170 }
  0xf6   :  { %v265_v19 = vpop.permute.xlu0 %264 }
  0xf9   :  { %327 = vmatmul.mubr.msk.bf16.gmra.mrb[4].mxu1 %vm188_vm2, %v337_v49 }
 0x1c4   :  { %v229_v51 = vpop.f32.mrb[0].mxu1 }
 0x1c5   :  { %v230_v52 = vadd.f32 %v229_v51, %v161_v50  ;;  %v231_v53 = vpop.f32.mrb[1].mxu1 }
 0x1c6   :  { %v232_v55 = vadd.f32 %v231_v53, %v161_v50  ;;  %v233_v56 = vpop.f32.mrb[2].mxu1 }
 0x1c7   :  { %v234_v57 = vadd.f32 %v233_v56, %v166_v54  ;;  %v235_v58 = vpop.f32.mrb[3].mxu1  ;;  %v248_v60 = vmax.f32 %v230_v52, 0.0 }
 0x1c8   :  { %v236_v59 = vadd.f32 %v235_v58, %v166_v54  ;;  %v249_v62 = vmax.f32 %v232_v55, 0.0 }
 0x1c9   :  { %v250_v61 = vmax.f32 %v234_v57, 0.0 }
 0x1ca   :  { %v251_v63 = vmax.f32 %v236_v59, 0.0 }
 0x1cb   :  { %v256_v0 = vpack.c.bf16 %v250_v61, %v248_v60 }
 0x1cc   :  { %v257_v2 = vpack.c.bf16 %v251_v63, %v249_v62  ;;  %v239_v3 = vpop.f32.mrb[4].mxu1 }
 0x1cd   :  { %v240_v4 = vadd.f32 %v239_v3, %v171_v1  ;;  %v241_v5 = vpop.f32.mrb[5].mxu1 }
 0x1ce   :  { %v242_v7 = vadd.f32 %v241_v5, %v171_v1  ;;  %v243_v8 = vpop.f32.mrb[6].mxu1  ;;  %270 = vmatprep.subr.bf16.mxu0 %v257_v2 }
 0x1cf   :  { %v244_v9 = vadd.f32 %v243_v8, %v176_v6  ;;  %v245_v10 = vpop.f32.mrb[7].mxu1  ;;  %271 = vmatpush1.bf16.msra.mxu0 %v256_v0  ;;  %v252_v12 = vmax.f32 %v240_v4, 0.0 }
 0x1d0   :  { %v246_v11 = vadd.f32 %v245_v10, %v176_v6  ;;  %v253_v14 = vmax.f32 %v242_v7, 0.0 }
 0x1d1   :  { %v254_v13 = vmax.f32 %v244_v9, 0.0 }
 0x1d2   :  { %v255_v15 = vmax.f32 %v246_v11, 0.0 }
 0x1d3   :  { %v258_v16 = vpack.c.bf16 %v254_v13, %v252_v12 }
 0x1d4   :  { %v259_v17 = vpack.c.bf16 %v255_v15, %v253_v14 }
 0x1d6   :  { %272 = vmatprep.subr.bf16.mxu0 %v259_v17 }
 0x1d7   :  { %273 = vmatpush1.bf16.msra.mxu0 %v258_v16 }
 0x1da   :  { %328 = vmatmul.mubr.msk.bf16.vlgmr.msra.gmra.mrb[8].mxu0 %vm188_vm2, %v260_v18 }
 0x2ad   :  { %v304_v20 = vpop.f32.mrb[8].mxu0 }
 0x2ae   :  { %v305_v21 = vadd.f32 %v304_v20, %v265_v19  ;;  %v306_v22 = vpop.f32.mrb[9].mxu0 }
 0x2af   :  { %v307_v23 = vadd.f32 %v306_v22, %v265_v19  ;;  %v308_v24 = vpop.f32.mrb[10].mxu0 }
 0x2b0   :  { %311 = vst [vmem:[%s449_s7] sm:$0xff] %v305_v21  ;;  %v309_v25 = vpop.f32.mrb[11].mxu0 }
 0x2b1   :  { %312 = vst [vmem:[%s449_s7 + $0x8] sm:$0xff] %v307_v23 }

</bundles_post_ra>
